<compile_context>
chip_gen: v6e
topology: v6e:2x2x1
jax: 0.10.0
libtpu: 0.0.40
codegen_flags: <defaults>
</compile_context>

<pallas_src>
import functools

import jax
import jax.numpy as jnp
from jax.experimental import pallas as pl
from jax.experimental.pallas import tpu as pltpu

_NUM_BCE_CHANNELS = 3      # the module always loops over channels 0, 1, 2
_LOG_CLAMP = -100.0        # nn.BCELoss clamps log terms at -100
_TARGET_BLOCK_BYTES = 4 << 20   # ~4 MiB (padded) per streamed input block


def _elementwise_bce(x, t, assume_binary_targets):
    """Elementwise BCE in f32 with PyTorch's log clamp at -100."""
    if assume_binary_targets:
        # One log per element; ONLY valid when targets are exactly {0, 1}.
        return -jnp.maximum(jnp.log(jnp.where(t > 0.5, x, 1.0 - x)), _LOG_CLAMP)
    log_x = jnp.maximum(jnp.log(x), _LOG_CLAMP)
    log_1mx = jnp.maximum(jnp.log(1.0 - x), _LOG_CLAMP)
    return -(t * log_x + (1.0 - t) * log_1mx)


def _vmem_limit(working_bytes, temp_bytes):
    """Scoped-VMEM limit: double-buffered inputs + f32 temporaries + headroom."""
    return int(min(max(working_bytes + temp_bytes + (4 << 20), 16 << 20), 48 << 20))


# ---------------------------------------------------------------------------
# Dense path: hw % 128 == 0.  View (N, C, hw_r, 128); grid = (NB, 3, RB).
# ---------------------------------------------------------------------------
def _bce3_dense_kernel(x_ref, t_ref, o_ref, acc_ref, *,
                       tile_n, tile_r, n_total, rows_total,
                       has_batch_tail, has_row_tail, assume_binary_targets):
    """x_ref/t_ref: (tile_n, tile_r, 128); o_ref: (8, 128); acc_ref: (8, 128)."""
    i = pl.program_id(0)     # batch block ("parallel": split across TCs on v7x)
    ch = pl.program_id(1)    # channel 0..2 (only these are ever DMA'd)
    j = pl.program_id(2)     # row block within a channel slab

    @pl.when((ch == 0) & (j == 0))
    def _():
        acc_ref[...] = jnp.zeros_like(acc_ref)

    x = x_ref[...].astype(jnp.float32)
    t = t_ref[...].astype(jnp.float32)
    bce = _elementwise_bce(x, t, assume_binary_targets)

    def _accumulate(v):
        part = jnp.sum(v, axis=0)                    # (tile_r, 128), vreg adds only
        if tile_r % 8 == 0:
            # Fold row groups of 8 into the (8, 128) accumulator: layout
            # preserving reshape + pure VPU adds (no per-step XLU reduce).
            acc_ref[...] += part.reshape(tile_r // 8, 8, 128).sum(axis=0)
        else:
            acc_ref[0:1, :] = acc_ref[0:1, :] + jnp.sum(part, axis=0, keepdims=True)

    if not (has_batch_tail or has_row_tail):
        _accumulate(bce)
    else:
        # At most one tail kind exists by construction; mask only on that tile.
        if has_batch_tail:
            is_tail = i == pl.num_programs(0) - 1
        else:
            is_tail = j == pl.num_programs(2) - 1

        @pl.when(jnp.logical_not(is_tail))
        def _():
            _accumulate(bce)

        @pl.when(is_tail)
        def _():
            if has_batch_tail:
                idx = jax.lax.broadcasted_iota(jnp.int32, bce.shape, 0)
                limit = n_total - i * tile_n
            else:
                idx = jax.lax.broadcasted_iota(jnp.int32, bce.shape, 1)
                limit = rows_total - j * tile_r
            # Keep this a true select (not a multiply): OOB lanes may hold NaN.
            _accumulate(jnp.where(idx < limit, bce, 0.0))

    @pl.when((ch == pl.num_programs(1) - 1) & (j == pl.num_programs(2) - 1))
    def _():
        # Per-batch-block partial sums; final (cheap) reduction happens outside.
        o_ref[...] = acc_ref[...]


def _bce3_dense_call(inp, target, n, c, hw, assume_binary_targets):
    hw_r = hw // 128
    x = inp.reshape(n, c, hw_r, 128)        # copy-free views of the NCHW layout
    t = target.reshape(n, c, hw_r, 128)

    itemsize = max(jnp.dtype(x.dtype).itemsize, jnp.dtype(t.dtype).itemsize)
    granule = max(8, 32 // itemsize)        # VMEM sublane padding granule

    target_rows = max(granule,
                      (_TARGET_BLOCK_BYTES // (128 * itemsize)) // granule * granule)

    if hw_r >= target_rows:
        # Large spatial: tile rows of one sample-channel slab per step.
        tile_n, tile_r = 1, target_rows
        nb, rb = n, pl.cdiv(hw_r, tile_r)
        has_batch_tail, has_row_tail = False, (hw_r % tile_r != 0)
    else:
        # Small spatial: fold several samples into one block so each step
        # still streams ~_TARGET_BLOCK_BYTES per input (kills grid overhead).
        tile_r, rb = hw_r, 1
        padded_rows = -(-hw_r // granule) * granule
        per_sample = padded_rows * 128 * itemsize
        tile_n = max(1, min(n, _TARGET_BLOCK_BYTES // per_sample))
        nb = pl.cdiv(n, tile_n)
        has_batch_tail, has_row_tail = (n % tile_n != 0), False

    # VMEM budget from the *padded* tile size (feedback: raw HBM bytes undercount).
    padded_rows = -(-tile_r // granule) * granule
    padded_block = tile_n * padded_rows * 128 * itemsize
    working = 2 * 2 * padded_block                      # 2 inputs x double buffer
    f32_block = tile_n * padded_rows * 128 * 4
    vmem_limit = _vmem_limit(working, 3 * f32_block)

    kernel = functools.partial(
        _bce3_dense_kernel,
        tile_n=tile_n, tile_r=tile_r, n_total=n, rows_total=hw_r,
        has_batch_tail=has_batch_tail, has_row_tail=has_row_tail,
        assume_binary_targets=assume_binary_targets)

    partials = pl.pallas_call(
        kernel,
        out_shape=jax.ShapeDtypeStruct((nb, 8, 128), jnp.float32),
        grid_spec=pltpu.PrefetchScalarGridSpec(
            num_scalar_prefetch=0,
            grid=(nb, _NUM_BCE_CHANNELS, rb),
            in_specs=[
                pl.BlockSpec((tile_n, None, tile_r, 128),
                             lambda i, ch, j: (i, ch, j, 0)),
                pl.BlockSpec((tile_n, None, tile_r, 128),
                             lambda i, ch, j: (i, ch, j, 0)),
            ],
            out_specs=pl.BlockSpec((None, 8, 128), lambda i, ch, j: (i, 0, 0)),
            scratch_shapes=[pltpu.VMEM((8, 128), jnp.float32)],
        ),
        compiler_params=pltpu.CompilerParams(
            dimension_semantics=("parallel", "arbitrary", "arbitrary"),
            vmem_limit_bytes=vmem_limit,
        ),
    )(x, t)
    return partials


# ---------------------------------------------------------------------------
# Fallback path: hw not a multiple of 128 (kept close to the validated kernel).
# ---------------------------------------------------------------------------
def _bce3_fallback_kernel(x_ref, t_ref, o_ref, acc_ref, *,
                          hw, tile_hw, has_tail, assume_binary_targets):
    """x_ref/t_ref: (C, tile_hw); o_ref: (1, 1); acc_ref: (C, 1)."""
    j = pl.program_id(1)

    @pl.when(j == 0)
    def _():
        acc_ref[...] = jnp.zeros_like(acc_ref)

    x = x_ref[...].astype(jnp.float32)
    t = t_ref[...].astype(jnp.float32)
    bce = _elementwise_bce(x, t, assume_binary_targets)

    last = pl.num_programs(1) - 1

    def _accumulate(v):
        acc_ref[...] += jnp.sum(v, axis=-1, keepdims=True)

    if not has_tail:
        _accumulate(bce)
    else:
        # Lane (tail) mask only on the remainder tile; full tiles go unmasked.
        @pl.when(j != last)
        def _():
            _accumulate(bce)

        @pl.when(j == last)
        def _():
            lane = jax.lax.broadcasted_iota(jnp.int32, bce.shape, 1)
            # True select (not a multiply): OOB lanes may hold NaN.
            _accumulate(jnp.where(j * tile_hw + lane < hw, bce, 0.0))

    @pl.when(j == last)
    def _():
        # Only channels 0..2 contribute; rows >= 3 are never read, so any
        # NaN/garbage accumulated there is harmless.
        o_ref[...] = jnp.full((1, 1),
                              jnp.sum(acc_ref[0:_NUM_BCE_CHANNELS, :]),
                              dtype=o_ref.dtype)


def _bce3_fallback_call(inp, target, n, c, hw, assume_binary_targets):
    x = inp.reshape(n, c, hw)
    t = target.reshape(n, c, hw)

    # When C is much larger than 3, a one-time slice copy beats streaming the
    # dead channels on every step.  At small C the extra DMA is cheaper.
    if c > 8:
        x = x[:, :_NUM_BCE_CHANNELS]
        t = t[:, :_NUM_BCE_CHANNELS]
        c = _NUM_BCE_CHANNELS

    itemsize = max(jnp.dtype(x.dtype).itemsize, jnp.dtype(t.dtype).itemsize)
    granule = max(8, 32 // itemsize)

    if hw <= 128:
        tile_hw = hw
    else:
        lanes_target = max(128,
                           (_TARGET_BLOCK_BYTES // (c * itemsize)) // 128 * 128)
        tile_hw = min(lanes_target, (hw // 128) * 128)
    rb = pl.cdiv(hw, tile_hw)
    has_tail = (rb * tile_hw) != hw

    padded_c = -(-c // granule) * granule
    padded_hw = -(-tile_hw // 128) * 128
    padded_block = padded_c * padded_hw * itemsize
    working = 2 * 2 * padded_block
    vmem_limit = _vmem_limit(working, 3 * padded_c * padded_hw * 4)

    kernel = functools.partial(
        _bce3_fallback_kernel, hw=hw, tile_hw=tile_hw, has_tail=has_tail,
        assume_binary_targets=assume_binary_targets)

    partials = pl.pallas_call(
        kernel,
        out_shape=jax.ShapeDtypeStruct((n, 1, 1), jnp.float32),
        grid_spec=pltpu.PrefetchScalarGridSpec(
            num_scalar_prefetch=0,
            grid=(n, rb),
            in_specs=[
                pl.BlockSpec((None, c, tile_hw), lambda i, j: (i, 0, j)),
                pl.BlockSpec((None, c, tile_hw), lambda i, j: (i, 0, j)),
            ],
            out_specs=pl.BlockSpec((None, 1, 1), lambda i, j: (i, 0, 0)),
            scratch_shapes=[pltpu.VMEM((c, 1), jnp.float32)],
        ),
        compiler_params=pltpu.CompilerParams(
            dimension_semantics=("parallel", "arbitrary"),
            vmem_limit_bytes=vmem_limit,
        ),
    )(x, t)
    return partials


# ---------------------------------------------------------------------------
# Public wrapper
# ---------------------------------------------------------------------------
def bce_loss_first3(inp, target, assume_binary_targets=False):
    """Forward pass of the PyTorch BCELoss module (sum of BCE over channels 0..2)."""
    assert inp.shape == target.shape, "'input' and 'target' must have the same shape"
    assert inp.ndim >= 2 and inp.shape[1] >= _NUM_BCE_CHANNELS, \
        "module indexes channels 0..2, need at least 3 channels"

    n, c = inp.shape[0], inp.shape[1]
    hw = 1
    for d in inp.shape[2:]:
        hw *= d
    hw = max(hw, 1)
    m = n * hw  # elements per channel slice (BCELoss 'mean' denominator)

    if hw % 128 == 0:
        partials = _bce3_dense_call(inp, target, n, c, hw, assume_binary_targets)
    else:
        partials = _bce3_fallback_call(inp, target, n, c, hw, assume_binary_targets)

    return jnp.sum(partials) * jnp.float32(1.0 / float(m))


def _reference_bce_first3(inp, target):
    """Pure-JAX reference mirroring the PyTorch module."""
    x = inp.astype(jnp.float32)
    t = target.astype(jnp.float32)
    tot = jnp.float32(0.0)
    for i in range(_NUM_BCE_CHANNELS):
        p = x[:, i]
        g = t[:, i]
        lp = jnp.maximum(jnp.log(p), _LOG_CLAMP)
        l1p = jnp.maximum(jnp.log(1.0 - p), _LOG_CLAMP)
        tot = tot + jnp.mean(-(g * lp + (1.0 - g) * l1p))
    return tot


if __name__ == "__main__":
    key = jax.random.PRNGKey(0)
    k0, k1, k2 = jax.random.split(key, 3)

    def _make(shape, k):
        ka, kb = jax.random.split(k)
        x = jax.nn.sigmoid(jax.random.normal(ka, shape, dtype=jnp.float32))
        t = (jax.random.uniform(kb, shape) > 0.5).astype(jnp.float32)
        return x, t

    # Primary case: dense path (hw % 128 == 0), batch-folded blocks.
    inp, target = _make((2, 4, 16, 16), k0)
    loss = jax.block_until_ready(bce_loss_first3(inp, target))
    ref = jax.block_until_ready(_reference_bce_first3(inp, target))
    assert jnp.allclose(loss, ref, rtol=1e-5, atol=1e-5), (loss, ref)

    # Dense path with sublane-aligned (multiple-of-8) row fold.
    inp, target = _make((2, 4, 32, 32), k1)
    loss = jax.block_until_ready(bce_loss_first3(inp, target))
    ref = jax.block_until_ready(_reference_bce_first3(inp, target))
    assert jnp.allclose(loss, ref, rtol=1e-5, atol=1e-5), (loss, ref)

    # Fallback path: hw not a multiple of 128, tail-masked last tile, C > 3.
    inp, target = _make((2, 5, 12, 12), k2)
    loss = jax.block_until_ready(bce_loss_first3(inp, target))
    ref = jax.block_until_ready(_reference_bce_first3(inp, target))
    assert jnp.allclose(loss, ref, rtol=1e-5, atol=1e-5), (loss, ref)

    print("KERNEL_OK")
</pallas_src>

<mosaic_0001>
module attributes {stable_mosaic.version = 11 : i64} {
  func.func @_bce3_dense_kernel(%arg0: i32, %arg1: i32, %arg2: i32, %arg3: memref<2x1x2x128xf32, #tpu.memory_space<vmem>>, %arg4: memref<2x1x2x128xf32, #tpu.memory_space<vmem>>, %arg5: memref<1x8x128xf32, #tpu.memory_space<vmem>>, %arg6: memref<8x128xf32, #tpu.memory_space<vmem>>) attributes {dimension_semantics = [#tpu.dimension_semantics<parallel>, #tpu.dimension_semantics<arbitrary>, #tpu.dimension_semantics<arbitrary>], iteration_bounds = array<i64: 1, 3, 1>, scalar_prefetch = 0 : i64, scratch_operands = 1 : i64, tpu.core_type = #tpu.core_type<tc>, window_params = [{transform_indices = @transform_0, window_bounds = array<i64: 2, 1, 2, 128>}, {transform_indices = @transform_1, window_bounds = array<i64: 2, 1, 2, 128>}, {transform_indices = @transform_2, window_bounds = array<i64: 1, 8, 128>}]} {
    %c0_i32 = arith.constant 0 : i32
    %0 = arith.cmpi eq, %arg1, %c0_i32 : i32
    %c0_i32_0 = arith.constant 0 : i32
    %1 = arith.cmpi eq, %arg2, %c0_i32_0 : i32
    %2 = arith.andi %0, %1 : i1
    %3 = arith.extui %2 : i1 to i32
    %c0_i32_1 = arith.constant 0 : i32
    %4 = arith.cmpi ne, %3, %c0_i32_1 : i32
    scf.if %4 {
      %cst_21 = arith.constant 0.000000e+00 : f32
      %35 = vector.broadcast %cst_21 : f32 to vector<8x128xf32>
      %c0_22 = arith.constant 0 : index
      %c0_23 = arith.constant 0 : index
      %36 = vector.load %arg6[%c0_22, %c0_23] : memref<8x128xf32, #tpu.memory_space<vmem>>, vector<8x128xf32>
      tpu.vector_store %arg6[%c0_22, %c0_23], %35 {strides = array<i32>} : memref<8x128xf32, #tpu.memory_space<vmem>>, vector<8x128xf32>,
    } else {
    }
    %c0 = arith.constant 0 : index
    %c0_2 = arith.constant 0 : index
    %c0_3 = arith.constant 0 : index
    %c0_4 = arith.constant 0 : index
    %5 = vector.load %arg3[%c0, %c0_2, %c0_3, %c0_4] : memref<2x1x2x128xf32, #tpu.memory_space<vmem>>, vector<2x1x2x128xf32>
    %6 = vector.shape_cast %5 : vector<2x1x2x128xf32> to vector<2x2x128xf32>
    %c0_5 = arith.constant 0 : index
    %c0_6 = arith.constant 0 : index
    %c0_7 = arith.constant 0 : index
    %c0_8 = arith.constant 0 : index
    %7 = vector.load %arg4[%c0_5, %c0_6, %c0_7, %c0_8] : memref<2x1x2x128xf32, #tpu.memory_space<vmem>>, vector<2x1x2x128xf32>
    %8 = vector.shape_cast %7 : vector<2x1x2x128xf32> to vector<2x2x128xf32>
    %9 = math.log %6 : vector<2x2x128xf32>
    %cst = arith.constant -1.000000e+02 : f32
    %10 = vector.broadcast %cst : f32 to vector<2x2x128xf32>
    %11 = arith.maximumf %9, %10 : vector<2x2x128xf32>
    %cst_9 = arith.constant 1.000000e+00 : f32
    %12 = vector.broadcast %cst_9 : f32 to vector<2x2x128xf32>
    %13 = arith.subf %12, %6 : vector<2x2x128xf32>
    %14 = math.log %13 : vector<2x2x128xf32>
    %cst_10 = arith.constant -1.000000e+02 : f32
    %15 = vector.broadcast %cst_10 : f32 to vector<2x2x128xf32>
    %16 = arith.maximumf %14, %15 : vector<2x2x128xf32>
    %17 = arith.mulf %8, %11 : vector<2x2x128xf32>
    %cst_11 = arith.constant 1.000000e+00 : f32
    %18 = vector.broadcast %cst_11 : f32 to vector<2x2x128xf32>
    %19 = arith.subf %18, %8 : vector<2x2x128xf32>
    %20 = arith.mulf %19, %16 : vector<2x2x128xf32>
    %21 = arith.addf %17, %20 : vector<2x2x128xf32>
    %cst_12 = arith.constant 0.000000e+00 : f32
    %22 = vector.broadcast %cst_12 : f32 to vector<2x2x128xf32>
    %23 = arith.subf %22, %21 : vector<2x2x128xf32>
    %cst_13 = arith.constant dense<0.000000e+00> : vector<2x128xf32>
    %24 = vector.multi_reduction <add>, %23, %cst_13 [0] : vector<2x2x128xf32> to vector<2x128xf32>
    %c0_14 = arith.constant 0 : index
    %c0_15 = arith.constant 0 : index
    %25 = vector.load %arg6[%c0_14, %c0_15] : memref<8x128xf32, #tpu.memory_space<vmem>>, vector<1x128xf32>
    %cst_16 = arith.constant dense<0.000000e+00> : vector<128xf32>
    %26 = vector.multi_reduction <add>, %24, %cst_16 [0] : vector<2x128xf32> to vector<128xf32>
    %27 = vector.shape_cast %26 : vector<128xf32> to vector<1x128xf32>
    %28 = arith.addf %25, %27 : vector<1x128xf32>
    %c0_17 = arith.constant 0 : index
    %c0_18 = arith.constant 0 : index
    %29 = vector.load %arg6[%c0_17, %c0_18] : memref<8x128xf32, #tpu.memory_space<vmem>>, vector<1x128xf32>
    tpu.vector_store %arg6[%c0_17, %c0_18], %28 {strides = array<i32>} : memref<8x128xf32, #tpu.memory_space<vmem>>, vector<1x128xf32>,
    %c2_i32 = arith.constant 2 : i32
    %30 = arith.cmpi eq, %arg1, %c2_i32 : i32
    %c0_i32_19 = arith.constant 0 : i32
    %31 = arith.cmpi eq, %arg2, %c0_i32_19 : i32
    %32 = arith.andi %30, %31 : i1
    %33 = arith.extui %32 : i1 to i32
    %c0_i32_20 = arith.constant 0 : i32
    %34 = arith.cmpi ne, %33, %c0_i32_20 : i32
    scf.if %34 {
      %c0_21 = arith.constant 0 : index
      %c0_22 = arith.constant 0 : index
      %35 = vector.load %arg6[%c0_21, %c0_22] : memref<8x128xf32, #tpu.memory_space<vmem>>, vector<8x128xf32>
      %c0_23 = arith.constant 0 : index
      %c0_24 = arith.constant 0 : index
      %c0_25 = arith.constant 0 : index
      %36 = vector.load %arg5[%c0_23, %c0_24, %c0_25] : memref<1x8x128xf32, #tpu.memory_space<vmem>>, vector<1x8x128xf32>
      %37 = vector.shape_cast %36 : vector<1x8x128xf32> to vector<8x128xf32>
      %38 = vector.shape_cast %35 : vector<8x128xf32> to vector<1x8x128xf32>
      tpu.vector_store %arg5[%c0_23, %c0_24, %c0_25], %38 {strides = array<i32>} : memref<1x8x128xf32, #tpu.memory_space<vmem>>, vector<1x8x128xf32>,
    } else {
    }
    return
  }
  func.func @transform_0(%arg0: i32, %arg1: i32, %arg2: i32) -> (i32, i32, i32, i32) {
    %c0_i32 = arith.constant 0 : i32
    %c0_i32_0 = arith.constant 0 : i32
    return %arg0, %arg1, %arg2, %c0_i32 : i32, i32, i32, i32
  }
  func.func @transform_1(%arg0: i32, %arg1: i32, %arg2: i32) -> (i32, i32, i32, i32) {
    %c0_i32 = arith.constant 0 : i32
    %c0_i32_0 = arith.constant 0 : i32
    return %arg0, %arg1, %arg2, %c0_i32 : i32, i32, i32, i32
  }
  func.func @transform_2(%arg0: i32, %arg1: i32, %arg2: i32) -> (i32, i32, i32) {
    %c0_i32 = arith.constant 0 : i32
    %c0_i32_0 = arith.constant 0 : i32
    %c0_i32_1 = arith.constant 0 : i32
    return %arg0, %c0_i32, %c0_i32_0 : i32, i32, i32
  }
}

</mosaic_0001>

<bundles_post_ra>
// kernel: tpu_custom_call.1
= control target key start
LH: loop header
LB: loop body
LE: loop exit
PB: predicated region body
PF: predicated region fallthrough
CT: control target
= control target key end

     0   :  { %7 = vsyncpa [#allocation4], 0  ;;  %s797_s0 = inlined_call_operand.hbm [shape: f32[2,4,2,128], index: 0, kind: input, shape index: {}]   ;;  %s798_s1 = inlined_call_operand.hbm [shape: f32[2,4,2,128], index: 1, kind: input, shape index: {}]   ;;  %s799_s2 = inlined_call_operand.hbm [shape: f32[1,8,128], index: 2, kind: output, shape index: {}]  }
   0x1   :  { %9 = vsyncpa [#allocation4 + $0x1], 0 }
   0x2   :  { %10 = vsyncpa [#allocation7], 0 }
   0x3   :  { %12 = vsyncpa [#allocation7 + $0x1], 0 }
   0x4   :  { %13 = vsyncpa [#allocation5], 0  ;;  %s647_s9 = smov 0   ;;  %s649_s10 = smov 0  }
   0x5   :  { %s651_s11 = smov 0   ;;  %s653_s12 = smov 0  }
   0x6   :  { %s655_s13 = smov 0   ;;  %s657_s14 = smov 0  }
   0x7 LB: > { %s388_s15 = sadd.s32 4294967295, %s623_s14   ;;  %s34_s16 = sadd.s32 1, %s619_s13  ;;  %s623_s14 = sphi %s657_s14, %s19_s14   ;;  %s619_s13 = sphi %s655_s13, %s809_s13   ;;  %s615_s12 = sphi %s653_s12, %s808_s12   ;;  %s611_s11 = sphi %s651_s11, %s807_s11   ;;  %s607_s10 = sphi %s649_s10, %s806_s10   ;;  %s603_s9 = sphi %s647_s9, %s805_s9  }
   0x8   : > { %p36_p0 = scmp.ge.s32.totalorder %s34_s16, 3  ;;  %s49_s17 = sadd.s32 1, %s611_s11 }
   0x9   : > { %p56_p1 = scmp.ne.s32.totalorder %s611_s11, %s607_s10  ;;  %p57_p2 = scmp.eq.s32.totalorder %s623_s14, 0 }
   0xa   : > { %s811_s16 = smov (%p36_p0, %s34_s16), 0  ;;  %p62_p4 = scmp.ne.s32.totalorder %s607_s10, %s603_s9 }
   0xb   : > { %p683_p3 = por %p57_p2, %p56_p1  ;;  %s43_s19 = ssub.s32 %s619_s13, %s811_s16 }
   0xc   : > { %p63_p5 = scmp.eq.s32.totalorder %s388_s15, 0  ;;  %p47_p6 = scmp.eq.s32.totalorder %s43_s19, 0 }
   0xd   : > { %p421_p8 = scmp.lt.s32.totalorder %s623_s14, 3  ;;  %s701_s22 = sand.u32 1, %s611_s11  }
   0xe   : > { %p692_p7 = por %p63_p5, %p62_p4  ;;  %s392_s23 = sshll.u32 %s619_s13, 5 }
   0xf   : > { %s698_s21 = scalar_select %p47_p6, %s611_s11, %s49_s17  }
  0x10   : > { %s391_s24 = sshll.u32 %s701_s22, 2  ;;  %s155_s27 = scalar_lea.hbm %s797_s0, %s392_s23 }
  0x11   : > { %s146_s28 = scalar_lea.vmem [#allocation3], %s391_s24  ;;  %p714_p9 = pnand %p421_p8, %p683_p3 }
  0x12   : > { %s156_s29 = sshll.u32 %s146_s28, 4  ;;  %p395_p10 = scmp.ge.s32.totalorder %s623_s14, 1  ;;  %s157_s29 = int_to_ptr.vmem [resolvable:$true] %s156_s29 }
  0x13   : > { %s143_s3 = scalar_lea.sflag [#allocation4], %s701_s22  ;;  %p487_p11 = pneg %p714_p9 }
  0x14   : > { %s498_s4 = scalar_lea.vmem %s157_s29, 64  ;;  %s625_s5 = smov [#allocation3]  }
  0x15   : > { %p499_p12 = scmp.ne.s32.totalorder %s157_s29, %s498_s4  ;;  %s503_s6 = sshll.u32 %s625_s5, 4  ;;  %s504_s6 = int_to_ptr.vmem [resolvable:$false] %s503_s6 }
  0x16   : > { %s505_s7 = scalar_lea.vmem %s504_s6, 128  ;;  %p506_p1 = scmp.lt.s32.totalorder %s157_s29, %s504_s6 }
  0x17   : > { %p501_p13 = pnand %p499_p12, %p487_p11  ;;  %p507_p2 = scmp.lt.s32.totalorder %s505_s7, %s498_s4 }
  0x19   : > { %p502_p0 = pneg %p501_p13  ;;  %p508_p3 = por %p507_p2, %p506_p1 }
  0x1b   : > { %p509_p4 = pnand %p508_p3, %p502_p0 }
  0x1d   : > { %512 = shalt.err (!%p509_p4)
}
  0x1e   : > { %s626_s8 = smov 128   ;;  %s627_s9 = smov 32  }
  0x1f   : > { %s628_s17 = smov 2   ;;  %p188_p5 = scmp.lt.s32.totalorder %s623_s14, 4 }
  0x20   : > { %417 = dma.hbm_to_vmem [thread:$0]  (!%p714_p9), %s155_s27, 64, %s157_s29, %s143_s3, %s626_s8, %s627_s9, %s628_s17  }
  0x21   : > { %s179_s25 = scalar_lea.hbm %s798_s1, %s392_s23  ;;  %p735_p6 = pnand %p395_p10, %p188_p5 }
  0x22   : > { %s170_s28 = scalar_lea.vmem [#allocation6], %s391_s24  ;;  %s167_s5 = scalar_lea.sflag [#allocation7], %s701_s22 }
  0x23   : > { %s180_s4 = sshll.u32 %s170_s28, 4  ;;  %s629_s27 = smov [#allocation6]   ;;  %s181_s4 = int_to_ptr.vmem [resolvable:$true] %s180_s4 }
  0x24   : > { %s526_s6 = scalar_lea.vmem %s181_s4, 64  ;;  %s531_s29 = sshll.u32 %s629_s27, 4  ;;  %s532_s29 = int_to_ptr.vmem [resolvable:$false] %s531_s29 }
  0x25   : > { %p527_p8 = scmp.ne.s32.totalorder %s181_s4, %s526_s6  ;;  %s533_s23 = scalar_lea.vmem %s532_s29, 128 }
  0x26   : > { %p534_p0 = scmp.lt.s32.totalorder %s181_s4, %s532_s29  ;;  %p535_p10 = scmp.lt.s32.totalorder %s533_s23, %s526_s6 }
  0x27   : > { %p529_p12 = pnand %p527_p8, %p487_p11 }
  0x28   : > { %p536_p1 = por %p535_p10, %p534_p0 }
  0x29   : > { %p530_p13 = pneg %p529_p12 }
  0x2b   : > { %p537_p2 = pnand %p536_p1, %p530_p13 }
  0x2d   : > { %540 = shalt.err (!%p537_p2)
}
  0x2e   : > { %420 = dma.hbm_to_vmem [thread:$0]  (!%p714_p9), %s179_s25, 64, %s181_s4, %s167_s5, %s626_s8, %s627_s9, %s628_s17  }
  0x2f   : > { %192 = sbr.rel (%p735_p6) target bundleno = 132 (0x84), region = 28  ;;  %s194_s22 = sand.u32 (!%p735_p6), 1, %s607_s10  }
  0x30   : > { %s396_s24 = sshll.u32 (!%p735_p6), %s194_s22, 2  ;;  %s195_s3 = scalar_lea.sflag (!%p735_p6), [#allocation4], %s194_s22 }
  0x31   : > { %s198_s7 = scalar_lea.vmem (!%p735_p6), [#allocation3], %s396_s24 }
  0x34   : > { %590 = dma.done.wait (%p692_p7), %s195_s3, 64  }
  0x35   : > { %592 = vsyncadd (%p692_p7), %s195_s3, 4294967232  ;;  %s204_s18 = scalar_lea.sflag [#allocation7], %s194_s22  ;;  %s207_s19 = scalar_lea.vmem [#allocation6], %s396_s24 }
  0x36   : > { %594 = dma.done.wait (%p692_p7), %s204_s18, 64  }
  0x37   : > { %596 = vsyncadd (%p692_p7), %s204_s18, 4294967232  ;;  %p230_p9 = scmp.eq.s32.totalorder %s615_s12, 0 }
  0x38   : > { %v630_v0 = vmov (%p230_p9), 0.0  }
  0x39   : > { %235 = sbr.rel (!%p230_p9) target bundleno = 62 (0x3e), region = 40  ;;  %236 = vst [vmem:[#allocation2] sm:$0xff] (%p230_p9), %v630_v0 }
  0x3e PF: > { %v237_v1 = vld [vmem:[%s198_s7] sm:$0x3]  ;;  %v238_v2 = vld [vmem:[%s198_s7 + $0x2] sm:$0x3]  ;;  %p279_p11 = scmp.eq.s32.totalorder %s615_s12, 2  ;;  %vm265_vm0 = vcmask 1041408  }
  0x3f   : > { %477 = vlog2.f32 %v237_v1  ;;  %v247_v3 = vsub.f32 1.0, %v237_v1  ;;  %v248_v4 = vsub.f32 1.0, %v238_v2  ;;  %v239_v6 = vld [vmem:[%s207_s19] sm:$0x3]  ;;  %v240_v8 = vld [vmem:[%s207_s19 + $0x2] sm:$0x3] }
  0x40   : > { %479 = vlog2.f32 %v238_v2  ;;  %v257_v15 = vsub.f32 1.0, %v239_v6  ;;  %v258_v18 = vsub.f32 1.0, %v240_v8  ;;  %v269_v38 = vld [vmem:[#allocation2] sm:$0x1] }
  0x41   : > { %481 = vlog2.f32 %v247_v3 }
  0x42   : > { %483 = vlog2.f32 %v248_v4 }
  0x4c   : > { %v478_v5 = vpop.eup %477 }
  0x4d   : > { %v480_v7 = vpop.eup %479  ;;  %v242_v9 = vmul.f32 0.6931472, %v478_v5 }
  0x4e   : > { %v482_v10 = vpop.eup %481  ;;  %v244_v11 = vmul.f32 0.6931472, %v480_v7 }
  0x4f   : > { %v484_v12 = vpop.eup %483  ;;  %v245_v13 = vmax.f32 %v242_v9, -100.0  ;;  %v250_v14 = vmul.f32 0.6931472, %v482_v10 }
  0x50   : > { %v246_v16 = vmax.f32 %v244_v11, -100.0  ;;  %v252_v17 = vmul.f32 0.6931472, %v484_v12 }
  0x51   : > { %v253_v19 = vmax.f32 %v250_v14, -100.0  ;;  %v255_v20 = vmul.f32 %v245_v13, %v239_v6 }
  0x52   : > { %v254_v21 = vmax.f32 %v252_v17, -100.0  ;;  %v256_v22 = vmul.f32 %v246_v16, %v240_v8 }
  0x53   : > { %v259_v23 = vmul.f32 %v257_v15, %v253_v19 }
  0x54   : > { %v260_v24 = vmul.f32 %v258_v18, %v254_v21 }
  0x55   : > { %v261_v25 = vadd.f32 %v259_v23, %v255_v20 }
  0x56   : > { %v262_v26 = vadd.f32 %v260_v24, %v256_v22 }
  0x57   : > { %v263_v27 = vsub.f32 0.0, %v261_v25 }
  0x58   : > { %v264_v28 = vsub.f32 0.0, %v262_v26 }
  0x59   : > { %v266_v29 = vsel %vm265_vm0, %v263_v27, 0.0 }
  0x5a   : > { %v267_v30 = vsel %vm265_vm0, %v264_v28, 0.0 }
  0x5b   : > { %v268_v31 = vadd.f32 %v267_v30, %v266_v29 }
  0x5d   : > { %v270_v32 = vsel %vm265_vm0, %v268_v31, 0.0 }
  0x5e   : > { %v271_v33 = vrot.slane %v270_v32, 4 }
  0x60   : > { %v272_v34 = vadd.f32 %v271_v33, %v270_v32 }
  0x62   : > { %v273_v35 = vrot.slane %v272_v34, 2 }
  0x64   : > { %v274_v36 = vadd.f32 %v273_v35, %v272_v34 }
  0x66   : > { %v275_v37 = vrot.slane %v274_v36, 1 }
  0x68   : > { %v276_v39 = vadd.f32 %v275_v37, %v274_v36  ;;  %283 = sbr.rel (!%p279_p11) target bundleno = 117 (0x75), region = 44 }
  0x6a   : > { %v277_v40 = vadd.f32 %v276_v39, %v269_v38 }
  0x6c   : > { %278 = vst [vmem:[#allocation2] sm:$0x1] %v277_v40 }
  0x73   : > { %v284_v41 = vld [vmem:[#allocation2] sm:$0xff] }
  0x74   : > { %285 = vst [vmem:[#allocation8] sm:$0xff] %v284_v41 }
  0x75 PF: > { %p764_p7 = scmp.eq.s32.totalorder %s388_s15, 2  ;;  %s631_s30 = smov [#allocation8]  }
  0x76   : > { %s295_s8 = sshll.u32 %s631_s30, 4  ;;  %s296_s8 = int_to_ptr.vmem [resolvable:$true] %s295_s8 }
  0x77   : > { %s541_s9 = scalar_lea.vmem %s296_s8, 128  ;;  %p548_p6 = scmp.lt.s32.totalorder %s296_s8, %s296_s8 }
  0x78   : > { %p542_p3 = scmp.ne.s32.totalorder %s296_s8, %s541_s9  ;;  %p549_p8 = scmp.lt.s32.totalorder %s541_s9, %s541_s9 }
  0x7a   : > { %p543_p4 = pnand %p542_p3, %p764_p7  ;;  %p550_p12 = por %p549_p8, %p548_p6 }
  0x7c   : > { %p544_p5 = pneg %p543_p4 }
  0x7e   : > { %p551_p13 = pnand %p550_p12, %p544_p5 }
  0x80   : > { %554 = shalt.err (!%p551_p13)
}
  0x81   : > { %411 = dma.vmem_to_hbm [thread:$0]  (%p764_p7), %s296_s8, 128, %s799_s2, [#allocation5]  }
  0x82   : > { %598 = dma.done.wait (%p764_p7), [#allocation5], 128  }
  0x83   : > { %600 = vsyncadd (%p764_p7), [#allocation5], 4294967168 }
  0x84 PF: > { %s19_s14 = sadd.s32 1, %s623_s14   ;;  %s805_s9 = smov %s607_s10 }
  0x85   : > { %p16_p0 = scmp.ge.s32.totalorder %s19_s14, 5   ;;  %s806_s10 = smov %s611_s11 }
  0x86   : > { %s807_s11 = smov %s698_s21  ;;  %s808_s12 = smov %s619_s13 }
  0x87   : > { %s809_s13 = smov %s811_s16  ;;  %18 = sbr.rel (!%p16_p0) target bundleno = 7 (0x7), region = 87 }
  0x8c   :  { %308 = vsyncpa [#allocation4], 1 }
  0x8d   :  { %310 = vsyncpa [#allocation4 + $0x1], 1 }
  0x8e   :  { %311 = vsyncpa [#allocation7], 1 }
  0x8f   :  { %313 = vsyncpa [#allocation7 + $0x1], 1 }
  0x90   :  { %314 = vsyncpa [#allocation5], 1 }
  0x91   :  { %316 = vsyncpa [#allocation5 + $0x1], 1 }

</bundles_post_ra>
